<compile_context>
chip_gen: v7x
topology: tpu7x:2x2x1
jax: 0.10.0
libtpu: 0.0.40
codegen_flags: <defaults>
</compile_context>

<pallas_src>
import functools

import jax
import jax.numpy as jnp
from jax.experimental import pallas as pl
from jax.experimental.pallas import tpu as pltpu


def _make_divisible(v, divisor, min_value=None):
    if min_value is None:
        min_value = divisor
    new_v = max(min_value, int(v + divisor / 2) // divisor * divisor)
    if new_v < 0.9 * v:
        new_v += divisor
    return new_v


def _se_kernel(x_ref, w1_ref, b1_ref, w2_ref, b2_ref, o_ref, *, inv_hw):
    """TB batch samples per grid step.

    x_ref : (TB, C, HW)  input activations (HW = H*W, lane-dense last dim)
    w1_ref: (C, R)       conv_reduce weight (in x out), f32
    b1_ref: (1, R)       conv_reduce bias, f32
    w2_ref: (R, C)       conv_expand weight (in x out), f32
    b2_ref: (1, C)       conv_expand bias, f32
    o_ref : (TB, C, HW)  output (same dtype as x)
    """
    x = x_ref[...]
    # squeeze: global average pool, accumulated in f32 (Mosaic masks the lane
    # tail when HW is not a multiple of 128).
    m = jnp.sum(x.astype(jnp.float32), axis=-1) * inv_hw                  # (TB, C)
    # conv_reduce (1x1 conv == matmul) + bias, SiLU  -- tiny, hidden under DMA
    h = jnp.dot(m, w1_ref[...], preferred_element_type=jnp.float32) + b1_ref[...]
    h = h * jax.nn.sigmoid(h)                                             # (TB, R)
    # conv_expand + bias, sigmoid gate
    s = jnp.dot(h, w2_ref[...], preferred_element_type=jnp.float32) + b2_ref[...]
    g = jax.nn.sigmoid(s)                                                 # (TB, C)
    # excite: multiply in x's native dtype (bf16-native on v6e/v7x; f32 if f32).
    o_ref[...] = x * g.astype(x.dtype)[:, :, None]


def squeeze_excite(x, w_reduce, b_reduce, w_expand, b_expand, block_batch=None):
    """x: (B, C, H, W); weights in PyTorch conv layout:
       w_reduce: (R, C, 1, 1), b_reduce: (R,), w_expand: (C, R, 1, 1), b_expand: (C,).
       I/O runs at x.dtype; feed a bf16 x (produced upstream) for bf16 traffic."""
    B, C, H, W = x.shape
    R = w_reduce.shape[0]
    HW = H * W

    # Free, contiguous reshape; no pad, no dtype cast.
    x_flat = x.reshape(B, C, HW)

    # --- per-generation block sizing -----------------------------------------
    try:
        vmem_cap = pltpu.get_tpu_info().vmem_capacity_bytes
    except Exception:  # interpret mode / non-TPU backend
        vmem_cap = 128 * 1024 * 1024
    if vmem_cap <= 64 * 1024 * 1024:          # v7x: 64 MiB VMEM, 3.2 TB/s HBM
        target_bytes = 6 * 1024 * 1024
        vmem_limit = 48 * 1024 * 1024
        desired_steps = 4                     # 2 steps per TensorCore (2 TCs)
    else:                                     # v5e / v6e: 128 MiB VMEM
        target_bytes = 12 * 1024 * 1024
        vmem_limit = 64 * 1024 * 1024
        desired_steps = 2
    per_sample_bytes = C * HW * x.dtype.itemsize
    tb = int(max(1, min(B, target_bytes // max(1, per_sample_bytes))))
    # Prefer block size over step count: only split into more grid steps while
    # each block stays >= ~1 MiB.
    min_block_bytes = 1 * 1024 * 1024
    while (-(-B // tb)) < desired_steps and tb > 1 \
            and (-(-tb // 2)) * per_sample_bytes >= min_block_bytes:
        tb = -(-tb // 2)
    if block_batch is not None:               # explicit override (for tests)
        tb = int(block_batch)
    grid = (pl.cdiv(B, tb),)                  # last block may be partial; OK

    # 1x1 conv weights -> (in, out) matmul layout, f32, resident across steps.
    w1 = jnp.transpose(w_reduce.reshape(R, C), (1, 0)).astype(jnp.float32)   # (C, R)
    w2 = jnp.transpose(w_expand.reshape(C, R), (1, 0)).astype(jnp.float32)   # (R, C)
    b1 = b_reduce.reshape(1, R).astype(jnp.float32)
    b2 = b_expand.reshape(1, C).astype(jnp.float32)

    kernel = functools.partial(_se_kernel, inv_hw=1.0 / HW)

    out = pl.pallas_call(
        kernel,
        out_shape=jax.ShapeDtypeStruct((B, C, HW), x.dtype),
        grid=grid,
        in_specs=[
            # Last two block dims equal the full array dims -> (8,128) rule OK.
            pl.BlockSpec((tb, C, HW), lambda b: (b, 0, 0)),
            # Constant-index weight/bias blocks stay resident across grid steps.
            pl.BlockSpec((C, R), lambda b: (0, 0)),
            pl.BlockSpec((1, R), lambda b: (0, 0)),
            pl.BlockSpec((R, C), lambda b: (0, 0)),
            pl.BlockSpec((1, C), lambda b: (0, 0)),
        ],
        out_specs=pl.BlockSpec((tb, C, HW), lambda b: (b, 0, 0)),
        compiler_params=pltpu.CompilerParams(
            dimension_semantics=("parallel",),
            vmem_limit_bytes=vmem_limit,
        ),
    )(x_flat, w1, b1, w2, b2)
    # TODO(synk): when x is donated at the jit boundary, also pass
    # input_output_aliases={0: 0} so the output reuses x's HBM buffer.

    return out.reshape(B, C, H, W)


def squeeze_excite_ref(x, w_reduce, b_reduce, w_expand, b_expand):
    """Pure-JAX reference mirroring the PyTorch module."""
    R, C = w_reduce.shape[:2]
    m = jnp.mean(x, axis=(2, 3))                                       # (B,C)
    h = m @ w_reduce.reshape(R, C).T + b_reduce                        # (B,R)
    h = h * jax.nn.sigmoid(h)                                          # SiLU
    s = h @ w_expand.reshape(C, R).T + b_expand                        # (B,C)
    g = jax.nn.sigmoid(s)[:, :, None, None]
    return x * g


if __name__ == "__main__":
    # Module hyperparams: channels of x == hidden_dim; reduced via se_ratio.
    B, H, W = 2, 16, 16
    in_chs = 32
    hidden_dim = 32
    se_ratio = 0.25
    divisor = 1
    reduced_chs = _make_divisible(in_chs * se_ratio, divisor)          # -> 8

    key = jax.random.PRNGKey(0)
    k_x, k_w1, k_b1, k_w2, k_b2, k_x2 = jax.random.split(key, 6)

    x = jax.random.normal(k_x, (B, hidden_dim, H, W), dtype=jnp.float32)
    # Deterministic synthetic parameters (PyTorch conv2d layout: out, in, 1, 1)
    w_reduce = 0.1 * jax.random.normal(k_w1, (reduced_chs, hidden_dim, 1, 1),
                                       dtype=jnp.float32)
    b_reduce = 0.1 * jax.random.normal(k_b1, (reduced_chs,), dtype=jnp.float32)
    w_expand = 0.1 * jax.random.normal(k_w2, (hidden_dim, reduced_chs, 1, 1),
                                       dtype=jnp.float32)
    b_expand = 0.1 * jax.random.normal(k_b2, (hidden_dim,), dtype=jnp.float32)

    # f32 path (strict check)
    out = squeeze_excite(x, w_reduce, b_reduce, w_expand, b_expand)
    out = jax.block_until_ready(out)
    ref = squeeze_excite_ref(x, w_reduce, b_reduce, w_expand, b_expand)
    assert out.shape == x.shape and out.dtype == x.dtype
    assert jnp.allclose(out, ref, atol=1e-5, rtol=1e-5), "mismatch vs reference (f32)"

    # Non-multiple-of-128 spatial size + uneven batch grid (partial last block):
    # exercises masked lane tails and OOB-row handling.
    x2 = jax.random.normal(k_x2, (3, hidden_dim, 15, 15), dtype=jnp.float32)
    out2 = squeeze_excite(x2, w_reduce, b_reduce, w_expand, b_expand, block_batch=2)
    out2 = jax.block_until_ready(out2)
    ref2 = squeeze_excite_ref(x2, w_reduce, b_reduce, w_expand, b_expand)
    assert out2.shape == x2.shape and out2.dtype == x2.dtype
    assert jnp.allclose(out2, ref2, atol=1e-5, rtol=1e-5), "mismatch (partial blocks)"

    # Native bf16 input (bandwidth path when the producer already emits bf16):
    # excite multiply runs in bf16; loose tolerance for input quantization.
    x_bf16 = x.astype(jnp.bfloat16)
    out_bf16 = squeeze_excite(x_bf16, w_reduce, b_reduce, w_expand, b_expand)
    out_bf16 = jax.block_until_ready(out_bf16)
    ref_bf16 = squeeze_excite_ref(x_bf16.astype(jnp.float32),
                                  w_reduce, b_reduce, w_expand, b_expand)
    assert out_bf16.dtype == jnp.bfloat16
    assert jnp.allclose(out_bf16.astype(jnp.float32), ref_bf16,
                        atol=5e-2, rtol=5e-2), "mismatch (bf16 input)"

    print("KERNEL_OK")
</pallas_src>

<mosaic_0001>
module attributes {stable_mosaic.version = 11 : i64} {
  func.func @_se_kernel(%arg0: i32, %arg1: memref<2x32x256xf32, #tpu.memory_space<vmem>>, %arg2: memref<32x8xf32, #tpu.memory_space<vmem>>, %arg3: memref<1x8xf32, #tpu.memory_space<vmem>>, %arg4: memref<8x32xf32, #tpu.memory_space<vmem>>, %arg5: memref<1x32xf32, #tpu.memory_space<vmem>>, %arg6: memref<2x32x256xf32, #tpu.memory_space<vmem>>) attributes {dimension_semantics = [#tpu.dimension_semantics<parallel>], iteration_bounds = array<i64: 1>, scalar_prefetch = 0 : i64, scratch_operands = 0 : i64, tpu.core_type = #tpu.core_type<tc>, window_params = [{transform_indices = @transform_0, window_bounds = array<i64: 2, 32, 256>}, {pipeline_mode = #tpu.pipeline_mode<synchronous>, transform_indices = @transform_1, window_bounds = array<i64: 32, 8>}, {pipeline_mode = #tpu.pipeline_mode<synchronous>, transform_indices = @transform_2, window_bounds = array<i64: 1, 8>}, {pipeline_mode = #tpu.pipeline_mode<synchronous>, transform_indices = @transform_3, window_bounds = array<i64: 8, 32>}, {pipeline_mode = #tpu.pipeline_mode<synchronous>, transform_indices = @transform_4, window_bounds = array<i64: 1, 32>}, {transform_indices = @transform_5, window_bounds = array<i64: 2, 32, 256>}]} {
    %c0 = arith.constant 0 : index
    %c0_0 = arith.constant 0 : index
    %c0_1 = arith.constant 0 : index
    %0 = vector.load %arg1[%c0, %c0_0, %c0_1] : memref<2x32x256xf32, #tpu.memory_space<vmem>>, vector<2x32x256xf32>
    %cst = arith.constant dense<0.000000e+00> : vector<2x32xf32>
    %1 = vector.multi_reduction <add>, %0, %cst [2] : vector<2x32x256xf32> to vector<2x32xf32>
    %cst_2 = arith.constant 3.906250e-03 : f32
    %2 = vector.broadcast %cst_2 : f32 to vector<2x32xf32>
    %3 = arith.mulf %1, %2 : vector<2x32xf32>
    %c0_3 = arith.constant 0 : index
    %c0_4 = arith.constant 0 : index
    %4 = vector.load %arg2[%c0_3, %c0_4] : memref<32x8xf32, #tpu.memory_space<vmem>>, vector<32x8xf32>
    %cst_5 = arith.constant dense<0.000000e+00> : vector<2x8xf32>
    %5 = tpu.matmul %3, %4, %cst_5 {dimension_numbers = #tpu.dot_dimension_numbers<[1], [0], [0], [1], [0, 0, 1, 1], [], []>} : vector<2x32xf32>, vector<32x8xf32>, vector<2x8xf32> -> vector<2x8xf32>
    %c0_6 = arith.constant 0 : index
    %c0_7 = arith.constant 0 : index
    %6 = vector.load %arg3[%c0_6, %c0_7] : memref<1x8xf32, #tpu.memory_space<vmem>>, vector<1x8xf32>
    %7 = vector.broadcast %6 : vector<1x8xf32> to vector<2x8xf32>
    %8 = arith.addf %5, %7 : vector<2x8xf32>
    %9 = arith.negf %8 : vector<2x8xf32>
    %10 = math.exp %9 : vector<2x8xf32>
    %cst_8 = arith.constant 1.000000e+00 : f32
    %11 = vector.broadcast %cst_8 : f32 to vector<2x8xf32>
    %12 = arith.addf %11, %10 : vector<2x8xf32>
    %13 = arith.divf %11, %12 : vector<2x8xf32>
    %14 = arith.mulf %8, %13 : vector<2x8xf32>
    %c0_9 = arith.constant 0 : index
    %c0_10 = arith.constant 0 : index
    %15 = vector.load %arg4[%c0_9, %c0_10] : memref<8x32xf32, #tpu.memory_space<vmem>>, vector<8x32xf32>
    %cst_11 = arith.constant dense<0.000000e+00> : vector<2x32xf32>
    %16 = tpu.matmul %14, %15, %cst_11 {dimension_numbers = #tpu.dot_dimension_numbers<[1], [0], [0], [1], [0, 0, 1, 1], [], []>} : vector<2x8xf32>, vector<8x32xf32>, vector<2x32xf32> -> vector<2x32xf32>
    %c0_12 = arith.constant 0 : index
    %c0_13 = arith.constant 0 : index
    %17 = vector.load %arg5[%c0_12, %c0_13] : memref<1x32xf32, #tpu.memory_space<vmem>>, vector<1x32xf32>
    %18 = vector.broadcast %17 : vector<1x32xf32> to vector<2x32xf32>
    %19 = arith.addf %16, %18 : vector<2x32xf32>
    %20 = arith.negf %19 : vector<2x32xf32>
    %21 = math.exp %20 : vector<2x32xf32>
    %cst_14 = arith.constant 1.000000e+00 : f32
    %22 = vector.broadcast %cst_14 : f32 to vector<2x32xf32>
    %23 = arith.addf %22, %21 : vector<2x32xf32>
    %24 = arith.divf %22, %23 : vector<2x32xf32>
    %25 = vector.shape_cast %24 : vector<2x32xf32> to vector<2x32x1xf32>
    %26 = vector.broadcast %25 : vector<2x32x1xf32> to vector<2x32x256xf32>
    %27 = arith.mulf %0, %26 : vector<2x32x256xf32>
    %c0_15 = arith.constant 0 : index
    %c0_16 = arith.constant 0 : index
    %c0_17 = arith.constant 0 : index
    %28 = vector.load %arg6[%c0_15, %c0_16, %c0_17] : memref<2x32x256xf32, #tpu.memory_space<vmem>>, vector<2x32x256xf32>
    tpu.vector_store %arg6[%c0_15, %c0_16, %c0_17], %27 {strides = array<i32>} : memref<2x32x256xf32, #tpu.memory_space<vmem>>, vector<2x32x256xf32>,
    return
  }
  func.func @transform_0(%arg0: i32) -> (i32, i32, i32) {
    %c0_i32 = arith.constant 0 : i32
    %c0_i32_0 = arith.constant 0 : i32
    %c0_i32_1 = arith.constant 0 : i32
    return %arg0, %c0_i32, %c0_i32_0 : i32, i32, i32
  }
  func.func @transform_1(%arg0: i32) -> (i32, i32) {
    %c0_i32 = arith.constant 0 : i32
    %c0_i32_0 = arith.constant 0 : i32
    %c0_i32_1 = arith.constant 0 : i32
    return %c0_i32, %c0_i32_0 : i32, i32
  }
  func.func @transform_2(%arg0: i32) -> (i32, i32) {
    %c0_i32 = arith.constant 0 : i32
    %c0_i32_0 = arith.constant 0 : i32
    %c0_i32_1 = arith.constant 0 : i32
    return %c0_i32, %c0_i32_0 : i32, i32
  }
  func.func @transform_3(%arg0: i32) -> (i32, i32) {
    %c0_i32 = arith.constant 0 : i32
    %c0_i32_0 = arith.constant 0 : i32
    %c0_i32_1 = arith.constant 0 : i32
    return %c0_i32, %c0_i32_0 : i32, i32
  }
  func.func @transform_4(%arg0: i32) -> (i32, i32) {
    %c0_i32 = arith.constant 0 : i32
    %c0_i32_0 = arith.constant 0 : i32
    %c0_i32_1 = arith.constant 0 : i32
    return %c0_i32, %c0_i32_0 : i32, i32
  }
  func.func @transform_5(%arg0: i32) -> (i32, i32, i32) {
    %c0_i32 = arith.constant 0 : i32
    %c0_i32_0 = arith.constant 0 : i32
    %c0_i32_1 = arith.constant 0 : i32
    return %arg0, %c0_i32, %c0_i32_0 : i32, i32, i32
  }
}

</mosaic_0001>

<bundles_post_ra>
// kernel: tpu_custom_call.1
= control target key start
LH: loop header
LB: loop body
LE: loop exit
PB: predicated region body
PF: predicated region fallthrough
CT: control target
= control target key end

     0   :  { %10 = vsyncpa [#allocation3], 0  ;;  %s844_s0 = inlined_call_operand.hbm [shape: f32[2,32,256], index: 0, kind: input, shape index: {}]   ;;  %s845_s1 = inlined_call_operand.hbm [shape: f32[32,8], index: 1, kind: input, shape index: {}]   ;;  %s846_s2 = inlined_call_operand.hbm [shape: f32[1,8], index: 2, kind: input, shape index: {}]   ;;  %s847_s3 = inlined_call_operand.hbm [shape: f32[8,32], index: 3, kind: input, shape index: {}]   ;;  %s848_s4 = inlined_call_operand.hbm [shape: f32[1,32], index: 4, kind: input, shape index: {}]   ;;  %s849_s5 = inlined_call_operand.hbm [shape: f32[2,32,256], index: 5, kind: output, shape index: {}]  }
   0x1   :  { %11 = vsyncpa [#allocation6], 0 }
   0x2   :  { %12 = vsyncpa [#allocation9], 0 }
   0x3   :  { %13 = vsyncpa [#allocation4], 0  ;;  %s651_s18 = smov [#allocation5]   ;;  %s511_s22 = scalar_lea.hbm %s845_s1, 512 }
   0x4   :  { %s31_s19 = sshll.u32 %s651_s18, 4  ;;  %p512_p0 = scmp.ne.s32.totalorder %s845_s1, %s511_s22  ;;  %s32_s19 = int_to_ptr.vmem [resolvable:$true] %s31_s19 }
   0x5   :  { %p515_p1 = scmp.lt.u32.totalorder %s511_s22, %s845_s1 }
   0x7   :  { %p517_p2 = pnand %p515_p1, %p512_p0 }
   0x9   :  { %520 = shalt.err (!%p517_p2)
}
   0xa   :  { %s521_s27 = scalar_lea.vmem %s32_s19, 512  ;;  %p526_p4 = scmp.lt.s32.totalorder %s32_s19, %s32_s19 }
   0xb   :  { %p522_p3 = scmp.ne.s32.totalorder %s32_s19, %s521_s27  ;;  %p527_p5 = scmp.lt.s32.totalorder %s521_s27, %s521_s27 }
   0xd   :  { %p528_p6 = por %p527_p5, %p526_p4 }
   0xf   :  { %p529_p7 = pnand %p528_p6, %p522_p3 }
  0x11   :  { %532 = shalt.err (!%p529_p7)
}
  0x12   :  { %s652_s28 = smov 128   ;;  %s653_s29 = smov 8  }
  0x13   :  { %37 = dma.hbm_to_vmem [thread:$0]  %s845_s1, 512, %s32_s19, [#allocation6], %s652_s28, %s652_s28, %s653_s29  }
  0x14   :  { %s654_s7 = smov [#allocation8]   ;;  %s655_s9 = smov [#allocation2]  }
  0x15   :  { %s54_s8 = sshll.u32 %s654_s7, 4  ;;  %s19_s10 = sshll.u32 %s655_s9, 4  ;;  %s55_s8 = int_to_ptr.vmem [resolvable:$true] %s54_s8  ;;  %s20_s10 = int_to_ptr.vmem [resolvable:$true] %s19_s10 }
  0x16   :  { %s533_s13 = scalar_lea.hbm %s847_s3, 128 }
  0x17   :  { %p534_p8 = scmp.ne.s32.totalorder %s847_s3, %s533_s13  ;;  %p537_p9 = scmp.lt.u32.totalorder %s533_s13, %s847_s3 }
  0x19   :  { %p539_p10 = pnand %p537_p9, %p534_p8 }
  0x1b   :  { %542 = shalt.err (!%p539_p10)
}
  0x1c   :  { %s543_s1 = scalar_lea.vmem %s55_s8, 128  ;;  %p548_p12 = scmp.lt.s32.totalorder %s55_s8, %s55_s8 }
  0x1d   :  { %p544_p11 = scmp.ne.s32.totalorder %s55_s8, %s543_s1  ;;  %p549_p13 = scmp.lt.s32.totalorder %s543_s1, %s543_s1 }
  0x1f   :  { %p550_p0 = por %p549_p13, %p548_p12 }
  0x21   :  { %p551_p1 = pnand %p550_p0, %p544_p11 }
  0x23   :  { %554 = shalt.err (!%p551_p1)
}
  0x24   :  { %57 = dma.hbm_to_vmem [thread:$0]  %s847_s3, 128, %s55_s8, [#allocation9]  }
  0x25   :  { %s555_s22 = scalar_lea.hbm %s844_s0, 2048 }
  0x26   :  { %p556_p2 = scmp.ne.s32.totalorder %s844_s0, %s555_s22  ;;  %p559_p3 = scmp.lt.u32.totalorder %s555_s22, %s844_s0 }
  0x28   :  { %p561_p4 = pnand %p559_p3, %p556_p2 }
  0x2a   :  { %564 = shalt.err (!%p561_p4)
}
  0x2b   :  { %s565_s27 = scalar_lea.vmem %s20_s10, 2048  ;;  %p570_p6 = scmp.lt.s32.totalorder %s20_s10, %s20_s10 }
  0x2c   :  { %p566_p5 = scmp.ne.s32.totalorder %s20_s10, %s565_s27  ;;  %p571_p7 = scmp.lt.s32.totalorder %s565_s27, %s565_s27 }
  0x2e   :  { %p572_p8 = por %p571_p7, %p570_p6 }
  0x30   :  { %p573_p9 = pnand %p572_p8, %p566_p5 }
  0x32   :  { %576 = shalt.err (!%p573_p9)
}
  0x33   :  { %s656_s3 = smov 256   ;;  %s657_s28 = smov 16  }
  0x34   :  { %25 = dma.hbm_to_vmem [thread:$0]  %s844_s0, 2048, %s20_s10, [#allocation3], %s656_s3, %s656_s3, %s657_s28  }
  0x35   :  { %s658_s6 = smov [#allocation7]   ;;  %s659_s8 = smov [#allocation10]  }
  0x36   :  { %s44_s7 = sshll.u32 %s658_s6, 4  ;;  %s64_s9 = sshll.u32 %s659_s8, 4  ;;  %s45_s7 = int_to_ptr.vmem [resolvable:$true] %s44_s7  ;;  %s65_s9 = int_to_ptr.vmem [resolvable:$true] %s64_s9 }
  0x37   :  { %s577_s13 = scalar_lea.hbm %s846_s2, 16 }
  0x38   :  { %p578_p10 = scmp.ne.s32.totalorder %s846_s2, %s577_s13  ;;  %p581_p11 = scmp.lt.u32.totalorder %s577_s13, %s846_s2 }
  0x3a   :  { %p583_p12 = pnand %p581_p11, %p578_p10 }
  0x3c   :  { %586 = shalt.err (!%p583_p12)
}
  0x3d   :  { %s587_s0 = scalar_lea.vmem %s45_s7, 16  ;;  %s591_s10 = scalar_lea.vmem %s45_s7, 32 }
  0x3e   :  { %p588_p13 = scmp.ne.s32.totalorder %s45_s7, %s587_s0  ;;  %p592_p0 = scmp.lt.s32.totalorder %s45_s7, %s45_s7 }
  0x3f   :  { %p593_p1 = scmp.lt.s32.totalorder %s591_s10, %s587_s0 }
  0x41   :  { %p594_p2 = por %p593_p1, %p592_p0 }
  0x43   :  { %p595_p3 = pnand %p594_p2, %p588_p13 }
  0x45   :  { %598 = shalt.err (!%p595_p3)
}
  0x46   :  { %47 = dma.hbm_to_vmem [thread:$0]  %s846_s2, 16, %s45_s7, [#allocation6]  }
  0x47   :  { %s599_s21 = scalar_lea.hbm %s848_s4, 16 }
  0x48   :  { %p600_p4 = scmp.ne.s32.totalorder %s848_s4, %s599_s21  ;;  %p603_p5 = scmp.lt.u32.totalorder %s599_s21, %s848_s4 }
  0x4a   :  { %p605_p6 = pnand %p603_p5, %p600_p4 }
  0x4c   :  { %608 = shalt.err (!%p605_p6)
}
  0x4d   :  { %s609_s26 = scalar_lea.vmem %s65_s9, 16  ;;  %s613_s27 = scalar_lea.vmem %s65_s9, 32 }
  0x4e   :  { %p610_p7 = scmp.ne.s32.totalorder %s65_s9, %s609_s26  ;;  %p614_p8 = scmp.lt.s32.totalorder %s65_s9, %s65_s9 }
  0x4f   :  { %p615_p9 = scmp.lt.s32.totalorder %s613_s27, %s609_s26 }
  0x51   :  { %p616_p10 = por %p615_p9, %p614_p8 }
  0x53   :  { %p617_p11 = pnand %p616_p10, %p610_p7 }
  0x55   :  { %620 = shalt.err (!%p617_p11)
}
  0x56   :  { %67 = dma.hbm_to_vmem [thread:$0]  %s848_s4, 16, %s65_s9, [#allocation9]  }
  0x57   :  { %643 = dma.done.wait [#allocation3], 2048  }
  0x58   :  { %644 = vsyncadd [#allocation3], 4294965248 }
  0x59   :  { %645 = dma.done.wait [#allocation6], 528  }
  0x5a   :  { %646 = vsyncadd [#allocation6], 4294966768 }
  0x5b   :  { %647 = dma.done.wait [#allocation9], 144  }
  0x5c   :  { %648 = vsyncadd [#allocation9], 4294967152  ;;  %v757_v0 = vld [vmem:[#allocation2 + $0x40] sm:$0xff]  ;;  %v759_v1 = vld [vmem:[#allocation2 + $0x48] sm:$0xff]  ;;  %v660_v27 = vmov 0.0|0.0   ;;  %vm661_vm0 = vmmov 0   ;;  %v150_v32 = vlaneseq }
  0x5d   :  { %v761_v2 = vld [vmem:[#allocation2] sm:$0xff]  ;;  %v111_v3 = vadd.f32 %v759_v1, %v757_v0  ;;  %v765_v4 = vld [vmem:[#allocation2 + $0x8] sm:$0xff]  ;;  %v767_v5 = vld [vmem:[#allocation2 + $0x50] sm:$0xff]  ;;  %484 = vmatprep.subr.bf16.mxu0 %v660_v27  ;;  %v662_v31 = vmov 0.0   ;;  %vm161_vm1 = vcmask 130112   ;;  %vm168_vm2 = vcmask 195712  }
  0x5e   :  { %v769_v6 = vld [vmem:[#allocation2 + $0x58] sm:$0xff]  ;;  %v99_v7 = vadd.f32 %v765_v4, %v761_v2  ;;  %v773_v8 = vld [vmem:[#allocation2 + $0x10] sm:$0xff]  ;;  %v781_v12 = vld [vmem:[#allocation2 + $0x60] sm:$0xff]  ;;  %476 = vmatprep.mubr.msk.f32.mxu0 %vm661_vm0, %v662_v31  ;;  %479 = vmatprep.subr.mxu1 %v662_v31  ;;  %v151_v34 = vand.u32 127, %v150_v32  ;;  %v805_v39 = vshrl.u32 %v150_v32, 7  ;;  %vm175_vm3 = vcmask 261312  }
  0x5f   :  { %v775_v9 = vld [vmem:[#allocation2 + $0x18] sm:$0xff]  ;;  %112 = vadd.xlane.f32.xlu1 %v111_v3  ;;  %v114_v10 = vadd.f32 %v769_v6, %v767_v5  ;;  %v783_v13 = vld [vmem:[#allocation2 + $0x68] sm:$0xff]  ;;  %v785_v14 = vld [vmem:[#allocation2 + $0x20] sm:$0xff]  ;;  %481 = vmatprep.mubr.msk.f32.mxu1 %vm661_vm0, %v662_v31  ;;  %vm196_vm4 = vcmask 1041409   ;;  %vm198_vm5 = vcmask 261120   ;;  %vm286_vm6 = vcmask 64512  }
  0x60   :  { %100 = vadd.xlane.f32.xlu0 %v99_v7  ;;  %v102_v11 = vadd.f32 %v775_v9, %v773_v8  ;;  %v787_v15 = vld [vmem:[#allocation2 + $0x28] sm:$0xff]  ;;  %v117_v16 = vadd.f32 %v783_v13, %v781_v12  ;;  %v793_v18 = vld [vmem:[#allocation2 + $0x70] sm:$0xff]  ;;  %v795_v19 = vld [vmem:[#allocation2 + $0x78] sm:$0xff]  ;;  %v156_v36 = vadd.s32 4294967288, %v151_v34  ;;  %v163_v38 = vadd.s32 4294967280, %v151_v34  ;;  %s663_s4 = smov [#allocation11]  }
  0x61   :  { %v105_v17 = vadd.f32 %v787_v15, %v785_v14  ;;  %v797_v20 = vld [vmem:[#allocation2 + $0x30] sm:$0xff]  ;;  %v799_v21 = vld [vmem:[#allocation2 + $0x38] sm:$0xff]  ;;  %v120_v22 = vadd.f32 %v795_v19, %v793_v18  ;;  %v131_v24 = vld [vmem:[#allocation5] sm:$0xff]  ;;  %v170_v43 = vadd.s32 4294967272, %v151_v34  ;;  %v154_v47 = vsub.s32 %v151_v34, %v805_v39  ;;  %s441_s30 = sshll.u32 %s663_s4, 4  ;;  %s442_s30 = int_to_ptr.vmem [resolvable:$true] %s441_s30 }
  0x62   :  { %v108_v23 = vadd.f32 %v799_v21, %v797_v20  ;;  %v132_v25 = vld [vmem:[#allocation5 + $0x8] sm:$0xff]  ;;  %v133_v28 = vld [vmem:[#allocation5 + $0x10] sm:$0xff]  ;;  %v134_v29 = vld [vmem:[#allocation5 + $0x18] sm:$0xff]  ;;  %v159_v41 = vsub.s32 %v156_v36, %v805_v39  ;;  %v166_v45 = vsub.s32 %v163_v38, %v805_v39  ;;  %s621_s6 = scalar_lea.vmem %s442_s30, 2048  ;;  %p626_p13 = scmp.lt.s32.totalorder %s442_s30, %s442_s30 }
  0x63   :  { %115 = vadd.xlane.f32.xlu1 %v114_v10  ;;  %v485_v26 = vpack.c.bf16 %v132_v25, %v131_v24  ;;  %v488_v30 = vpack.c.bf16 %v134_v29, %v133_v28  ;;  %v173_v54 = vsub.s32 %v170_v43, %v805_v39  ;;  %v278_v25 = vld [vmem:[#allocation8] sm:$0xff]  ;;  %v368_v43 = vsub.s32 0, %v805_v39  ;;  %p622_p12 = scmp.ne.s32.totalorder %s442_s30, %s621_s6  ;;  %p627_p0 = scmp.lt.s32.totalorder %s621_s6, %s621_s6 }
  0x64   :  { %103 = vadd.xlane.f32.xlu0 %v102_v11  ;;  %480 = vmatpush3.msra.mxu1 %v278_v25 }
  0x65   :  { %486 = vmatpush3.bf16.msra.mxu0 %v485_v26  ;;  %v455_v26 = vld [vmem:[#allocation7] ss:$0 sm:$0xff]  ;;  %p628_p1 = por %p627_p0, %p626_p13 }
  0x66   :  { %487 = vmatprep.subr.bf16.mxu0 %v660_v27 }
  0x67   :  { %118 = vadd.xlane.f32.xlu1 %v117_v16  ;;  %p629_p2 = pnand %p628_p1, %p622_p12 }
  0x68   :  { %106 = vadd.xlane.f32.xlu0 %v105_v17 }
  0x69   :  { %489 = vmatpush3.bf16.msra.mxu0 %v488_v30 }
  0x6b   :  { %121 = vadd.xlane.f32.xlu1 %v120_v22 }
  0x6c   :  { %109 = vadd.xlane.f32.xlu0 %v108_v23 }
  0xec   :  { %v113_v33 = vpop.xlane.xlu1 %112 }
  0xed   :  { %v101_v35 = vpop.xlane.xlu0 %100  ;;  %v127_v48 = vmul.f32 0.00390625, %v113_v33 }
  0xee   :  { %v123_v51 = vmul.f32 0.00390625, %v101_v35  ;;  %v458_v35 = vld [vmem:[#allocation10] ss:$0 sm:$0xff] }
  0xef   :  { %v180_v58 = vrot.slane %v127_v48, %v154_v47 }
  0xf0   :  { %v116_v37 = vpop.xlane.xlu1 %115  ;;  %v155_v62 = vrot.slane %v123_v51, %v154_v47 }
  0xf1   :  { %v104_v40 = vpop.xlane.xlu0 %103  ;;  %v128_v42 = vmul.f32 0.00390625, %v116_v37 }
  0xf2   :  { %v124_v44 = vmul.f32 0.00390625, %v104_v40 }
  0xf3   :  { %v184_v53 = vrot.slane %v128_v42, %v159_v41 }
  0xf4   :  { %v119_v46 = vpop.xlane.xlu1 %118  ;;  %v160_v55 = vrot.slane %v124_v44, %v159_v41 }
  0xf5   :  { %v129_v49 = vmul.f32 0.00390625, %v119_v46  ;;  %v107_v50 = vpop.xlane.xlu0 %106  ;;  %v185_v3 = vsel %vm161_vm1, %v184_v53, %v180_v58  ;;  %v387_v46 = vsub.s32 1, %v805_v39 }
  0xf6   :  { %v125_v52 = vmul.f32 0.00390625, %v107_v50  ;;  %v162_v10 = vsel %vm161_vm1, %v160_v55, %v155_v62 }
  0xf7   :  { %v189_v56 = vrot.slane %v129_v49, %v166_v45 }
  0xf8   :  { %v122_v57 = vpop.xlane.xlu1 %121  ;;  %v167_v59 = vrot.slane %v125_v52, %v166_v45 }
  0xf9   :  { %v130_v60 = vmul.f32 0.00390625, %v122_v57  ;;  %v110_v61 = vpop.xlane.xlu0 %109  ;;  %v190_v11 = vsel %vm168_vm2, %v189_v56, %v185_v3 }
  0xfa   :  { %v126_v63 = vmul.f32 0.00390625, %v110_v61  ;;  %v169_v17 = vsel %vm168_vm2, %v167_v59, %v162_v10 }
  0xfb   :  { %v194_v7 = vrot.slane %v130_v60, %v173_v54 }
  0xfc   :  { %v174_v16 = vrot.slane %v126_v63, %v173_v54 }
  0xfd   :  { %v195_v22 = vsel %vm175_vm3, %v194_v7, %v190_v11 }
  0xfe   :  { %v176_v23 = vsel %vm175_vm3, %v174_v16, %v169_v17 }
  0xff   :  { %v197_v24 = vsel %vm196_vm4, %v195_v22, %v176_v23 }
 0x100   :  { %477 = vmatmul.mubr.msk.f32.vlgmr.msra.gmra.mrb[0].mxu0 %vm198_vm5, %v197_v24 }
 0x1d3   :  { %v267_v27 = vpop.f32.mrb[0].mxu0 }
 0x1d4   :  { %v268_v28 = vadd.f32 %v455_v26, %v267_v27  ;;  %v478_v29 = vpop.f32.mrb[1].mxu0 }
 0x1d6   :  { %v457_v30 = vmul.f32 -1.442695, %v268_v28 }
 0x1d8   :  { %503 = vpow2.f32 %v457_v30 }
 0x1e2   :  { %v504_v31 = vpop.eup %503 }
 0x1e3   :  { %v274_v32 = vadd.f32 1.0, %v504_v31 }
 0x1e5   :  { %505 = vrcp.f32 %v274_v32 }
 0x1ef   :  { %v506_v33 = vpop.eup %505 }
 0x1f0   :  { %v277_v34 = vmul.f32 %v506_v33, %v268_v28 }
 0x1f2   :  { %482 = vmatmul.mubr.msk.f32.vlgmr.msra.gmra.mrb[0].mxu1 %vm286_vm6, %v277_v34 }
 0x2c5   :  { %v356_v36 = vpop.f32.mrb[0].mxu1 }
 0x2c6   :  { %v357_v37 = vadd.f32 %v458_v35, %v356_v36  ;;  %v483_v38 = vpop.f32.mrb[1].mxu1 }
 0x2c8   :  { %v460_v40 = vmul.f32 -1.442695, %v357_v37 }
 0x2ca   :  { %507 = vpow2.f32 %v460_v40 }
 0x2d4   :  { %v508_v41 = vpop.eup %507 }
 0x2d5   :  { %v363_v42 = vadd.f32 1.0, %v508_v41 }
 0x2d7   :  { %509 = vrcp.f32 %v363_v42 }
 0x2e1   :  { %v510_v44 = vpop.eup %509 }
 0x2e2   :  { %v369_v45 = vrot.slane %v510_v44, %v368_v43  ;;  %v388_v47 = vrot.slane %v510_v44, %v387_v46 }
 0x2e4   :  { %375 = vbcast.lane.b32.xlu1 %v369_v45, 264  ;;  %371 = vbcast.lane.b32.xlu0 %v369_v45, 256 }
 0x2e8   :  { %379 = vbcast.lane.b32.xlu1 %v369_v45, 272  ;;  %390 = vbcast.lane.b32.xlu0 %v388_v47, 256 }
 0x2ec   :  { %383 = vbcast.lane.b32.xlu1 %v369_v45, 280  ;;  %398 = vbcast.lane.b32.xlu0 %v388_v47, 272 }
 0x2f0   :  { %394 = vbcast.lane.b32.xlu1 %v388_v47, 264 }
 0x2f4   :  { %402 = vbcast.lane.b32.xlu1 %v388_v47, 280 }
 0x356   :  { %v376_v48 = vpop.permute.xlu1 %375  ;;  %v372_v49 = vpop.permute.xlu0 %371 }
 0x357   :  { %v406_v50 = vmul.f32 %v376_v48, %v773_v8  ;;  %v407_v51 = vmul.f32 %v376_v48, %v775_v9  ;;  %v404_v52 = vmul.f32 %v372_v49, %v761_v2  ;;  %v405_v53 = vmul.f32 %v372_v49, %v765_v4 }
 0x359   :  { %422 = vst [vmem:[#allocation11 + $0x10] sm:$0xff] %v406_v50  ;;  %423 = vst [vmem:[#allocation11 + $0x18] sm:$0xff] %v407_v51 }
 0x35a   :  { %420 = vst [vmem:[#allocation11] sm:$0xff] %v404_v52  ;;  %421 = vst [vmem:[#allocation11 + $0x8] sm:$0xff] %v405_v53  ;;  %v380_v39 = vpop.permute.xlu1 %379  ;;  %v391_v54 = vpop.permute.xlu0 %390 }
 0x35b   :  { %v408_v55 = vmul.f32 %v380_v39, %v785_v14  ;;  %v409_v56 = vmul.f32 %v380_v39, %v787_v15  ;;  %v412_v57 = vmul.f32 %v391_v54, %v757_v0  ;;  %v413_v8 = vmul.f32 %v391_v54, %v759_v1 }
 0x35d   :  { %424 = vst [vmem:[#allocation11 + $0x20] sm:$0xff] %v408_v55  ;;  %425 = vst [vmem:[#allocation11 + $0x28] sm:$0xff] %v409_v56 }
 0x35e   :  { %428 = vst [vmem:[#allocation11 + $0x40] sm:$0xff] %v412_v57  ;;  %429 = vst [vmem:[#allocation11 + $0x48] sm:$0xff] %v413_v8  ;;  %v384_v2 = vpop.permute.xlu1 %383  ;;  %v399_v4 = vpop.permute.xlu0 %398 }
 0x35f   :  { %v410_v9 = vmul.f32 %v384_v2, %v797_v20  ;;  %v411_v58 = vmul.f32 %v384_v2, %v799_v21  ;;  %v416_v59 = vmul.f32 %v399_v4, %v781_v12  ;;  %v417_v14 = vmul.f32 %v399_v4, %v783_v13 }
 0x361   :  { %426 = vst [vmem:[#allocation11 + $0x30] sm:$0xff] %v410_v9  ;;  %427 = vst [vmem:[#allocation11 + $0x38] sm:$0xff] %v411_v58 }
 0x362   :  { %432 = vst [vmem:[#allocation11 + $0x60] sm:$0xff] %v416_v59  ;;  %433 = vst [vmem:[#allocation11 + $0x68] sm:$0xff] %v417_v14  ;;  %v395_v0 = vpop.permute.xlu1 %394 }
 0x363   :  { %v414_v1 = vmul.f32 %v395_v0, %v767_v5  ;;  %v415_v15 = vmul.f32 %v395_v0, %v769_v6 }
 0x365   :  { %430 = vst [vmem:[#allocation11 + $0x50] sm:$0xff] %v414_v1  ;;  %431 = vst [vmem:[#allocation11 + $0x58] sm:$0xff] %v415_v15 }
 0x366   :  { %v403_v20 = vpop.permute.xlu1 %402 }
 0x367   :  { %v418_v21 = vmul.f32 %v403_v20, %v793_v18  ;;  %v419_v12 = vmul.f32 %v403_v20, %v795_v19 }
 0x369   :  { %434 = vst [vmem:[#allocation11 + $0x70] sm:$0xff] %v418_v21  ;;  %435 = vst [vmem:[#allocation11 + $0x78] sm:$0xff] %v419_v12 }
 0x36a   :  { %632 = shalt.err (!%p629_p2)
}
 0x36b   :  { %s633_s9 = scalar_lea.hbm %s849_s5, 2048 }
 0x36c   :  { %p634_p3 = scmp.ne.s32.totalorder %s849_s5, %s633_s9  ;;  %p637_p4 = scmp.lt.u32.totalorder %s633_s9, %s849_s5 }
 0x36e   :  { %p639_p5 = pnand %p637_p4, %p634_p3 }
 0x370   :  { %642 = shalt.err (!%p639_p5)
}
 0x371   :  { %447 = dma.vmem_to_hbm [thread:$0]  %s442_s30, 2048, %s849_s5, [#allocation4], %s656_s3, %s656_s3, %s657_s28  }
 0x372   :  { %649 = dma.done.wait [#allocation4], 2048  }
 0x373   :  { %650 = vsyncadd [#allocation4], 4294965248 }
 0x374   :  { %451 = vsyncpa [#allocation3], 1 }
 0x375   :  { %452 = vsyncpa [#allocation6], 1 }
 0x376   :  { %453 = vsyncpa [#allocation9], 1 }
 0x377   :  { %454 = vsyncpa [#allocation4], 1 }

</bundles_post_ra>
